<compile_context>
chip_gen: v7x
topology: tpu7x:2x2x1
jax: 0.10.0
libtpu: 0.0.40
codegen_flags: <defaults>
</compile_context>

<pallas_src>
import jax
import jax.numpy as jnp
from jax.experimental import pallas as pl
from jax.experimental.pallas import tpu as pltpu

# ---- module configuration -------------------------------------------------
B = 2
IN_CHANNELS = 8
OUT_CHANNELS = 8
NUM_GROUPS = 2
GROUP_IN = IN_CHANNELS // NUM_GROUPS      # 4
DIM = 16
K = 3
PAD = 1
S = B * NUM_GROUPS                        # 4 (batch, group) slices

# ---- kernel layout constants ----------------------------------------------
CONTRACT = 16                             # K*GROUP_IN (12) + 1 bias row, padded to 16
LANES = 128                               # lane-dense slab width
PATCH_LANES = S * DIM                     # 64  (lane index = slice*DIM + d)
W_ROWS = OUT_CHANNELS                     # 8
SLAB_ROWS = W_ROWS + CONTRACT             # 24
OUT_LANES = B * DIM                       # 32  (lane index = batch*DIM + d)


def shared_group_conv1d_kernel(slab_ref, o_ref):
    # slab_ref: (24, 128) f32 consolidated input (one contiguous DMA):
    #   rows 0..7   lanes 0..15 : w_ext[o, k*Cg+c] = weight[o,c,k]; col 12 = bias[o]
    #   rows 8..23  lanes 0..63 : patch[k*Cg+c, s*DIM+d] = xpad[s, c, d+k];
    #                             row 12 = ones (bias), rows 13..15 = 0
    # o_ref: (8, 128) f32 = (Co, B*DIM) normalized + group-summed output,
    #        zero-padded to 128 lanes (single unmasked full-vreg store).
    w = slab_ref[0:W_ROWS, 0:CONTRACT]                      # (8, 16)
    patch = slab_ref[W_ROWS:SLAB_ROWS, 0:PATCH_LANES]       # (16, 64)

    # One MXU pass covers every (batch, group) slice, every tap, and the bias.
    acc = jnp.dot(w, patch,
                  preferred_element_type=jnp.float32,
                  precision=jax.lax.Precision.HIGHEST)      # (Co, S*DIM) = (8, 64)

    # StructureAwareNormalization over the channel (sublane) axis:
    # torch.std_mean defaults => unbiased (n-1) variance, no epsilon (matches
    # the module exactly; rsqrt goes to the EUP slot, cross-sublane reduce to
    # the XLU slot -- both off the VPU critical path).
    mean = jnp.mean(acc, axis=0, keepdims=True)                              # (1, 64)
    var = jnp.sum((acc - mean) ** 2, axis=0, keepdims=True) / (OUT_CHANNELS - 1)
    y = (acc - mean) * jax.lax.rsqrt(var)                                    # (8, 64)

    # merge_method == 'sum': slices s = b*G + g; sum the two group slices of
    # each batch with static lane slices, then emit ONE full 128-lane store.
    g0 = y[:, 0 * DIM:1 * DIM] + y[:, 1 * DIM:2 * DIM]       # batch 0  (8, 16)
    g1 = y[:, 2 * DIM:3 * DIM] + y[:, 3 * DIM:4 * DIM]       # batch 1  (8, 16)
    lane_pad = jnp.zeros((OUT_CHANNELS, LANES - OUT_LANES), jnp.float32)
    o_ref[...] = jnp.concatenate([g0, g1, lane_pad], axis=1)  # (8, 128)


def prepare_params(weight, bias):
    """One-time (init) parameter preprocessing -> (8,128) weight rows of the slab.

    weight: (Co, GROUP_IN, K) f32, bias: (Co,) f32  (nn.Conv1d(Cg, Co, 3) layout).
    Column layout: col k*Cg + c = weight[o, c, k]; col 12 = bias[o]; rest 0.
    """
    w_flat = jnp.transpose(weight, (0, 2, 1)).reshape(OUT_CHANNELS, K * GROUP_IN)
    w_ext = jnp.concatenate(
        [w_flat.astype(jnp.float32),
         bias.astype(jnp.float32)[:, None],
         jnp.zeros((OUT_CHANNELS, CONTRACT - K * GROUP_IN - 1), jnp.float32)],
        axis=1)                                               # (8, 16)
    return jnp.pad(w_ext, ((0, 0), (0, LANES - CONTRACT)))    # (8, 128)


@jax.jit
def shared_group_conv1d(x, w_rows):
    """x: (B, IN_CHANNELS, DIM) f32; w_rows: precomputed (8,128) from prepare_params."""
    batch, in_channels, dim = x.shape
    assert batch == B and in_channels == IN_CHANNELS and dim == DIM

    # Per-call activation prep (one tiny XLA fusion): im2col with (k, c) on
    # sublanes and (slice, dim) on lanes, a ones row for the bias, and the
    # lane/sublane padding that packs it into the 128-wide slab with the
    # (init-time) weight rows -> a single contiguous input DMA.
    xg = x.reshape(S, GROUP_IN, DIM)                                       # free reshape
    xpad = jnp.pad(xg, ((0, 0), (0, 0), (PAD, PAD)))                       # (4, 4, 18)
    views = jnp.stack([xpad[:, :, k:k + DIM] for k in range(K)], axis=0)   # (K, S, Cg, DIM)
    patch = views.transpose(0, 2, 1, 3).reshape(K * GROUP_IN, PATCH_LANES)  # (12, 64)
    patch_ext = jnp.concatenate(
        [patch,
         jnp.ones((1, PATCH_LANES), jnp.float32),                           # bias row
         jnp.zeros((CONTRACT - K * GROUP_IN - 1, PATCH_LANES), jnp.float32)],
        axis=0)                                                             # (16, 64)
    patch_rows = jnp.pad(patch_ext, ((0, 0), (0, LANES - PATCH_LANES)))     # (16, 128)
    slab = jnp.concatenate([w_rows, patch_rows], axis=0)                    # (24, 128)

    out_slab = pl.pallas_call(
        shared_group_conv1d_kernel,
        out_shape=jax.ShapeDtypeStruct((OUT_CHANNELS, LANES), jnp.float32),
        in_specs=[pl.BlockSpec(memory_space=pltpu.MemorySpace.VMEM)],
        out_specs=pl.BlockSpec(memory_space=pltpu.MemorySpace.VMEM),
    )(slab)

    # (Co, B*DIM) lane-dense slab -> (B, Co, DIM); 512-byte relayout in XLA.
    return out_slab[:, :OUT_LANES].reshape(OUT_CHANNELS, B, DIM).transpose(1, 0, 2)


def reference_forward(x, weight, bias):
    """Pure-JAX reference mirroring the PyTorch forward exactly."""
    batch = x.shape[0]
    xg = x.reshape(batch * NUM_GROUPS, GROUP_IN, DIM)
    xpad = jnp.pad(xg, ((0, 0), (0, 0), (PAD, PAD)))
    out = jnp.zeros((batch * NUM_GROUPS, OUT_CHANNELS, DIM), jnp.float32)
    for k in range(K):
        out = out + jnp.einsum('oc,ncd->nod', weight[:, :, k],
                               xpad[:, :, k:k + DIM])
    out = out + bias[None, :, None]
    mean = out.mean(axis=1, keepdims=True)
    std = jnp.sqrt(jnp.sum((out - mean) ** 2, axis=1, keepdims=True)
                   / (OUT_CHANNELS - 1))
    out = (out - mean) / std
    return out.reshape(batch, NUM_GROUPS, OUT_CHANNELS, DIM).sum(axis=1)


if __name__ == "__main__":
    key = jax.random.PRNGKey(0)
    kx, kw, kb = jax.random.split(key, 3)
    x = jax.random.normal(kx, (B, IN_CHANNELS, DIM), jnp.float32)
    # Deterministic synthetic parameters (shapes from nn.Conv1d(Cg, Co, 3)).
    weight = 0.1 * jax.random.normal(kw, (OUT_CHANNELS, GROUP_IN, K), jnp.float32)
    bias = 0.1 * jax.random.normal(kb, (OUT_CHANNELS,), jnp.float32)

    # Init-time parameter preprocessing (hoisted out of the per-call path).
    w_rows = jax.block_until_ready(prepare_params(weight, bias))

    out = jax.block_until_ready(shared_group_conv1d(x, w_rows))
    ref = reference_forward(x, weight, bias)

    assert out.shape == (B, OUT_CHANNELS, DIM), out.shape
    max_err = float(jnp.max(jnp.abs(out - ref)))
    # Values are O(1) after normalization; precision=HIGHEST keeps the MXU
    # result within ~1e-5 of the f32 reference.
    assert jnp.allclose(out, ref, atol=1e-3, rtol=1e-3), max_err
    print("KERNEL_OK")
</pallas_src>

<mosaic_0001>
module attributes {stable_mosaic.version = 11 : i64} {
  func.func @shared_group_conv1d_kernel(%arg0: memref<24x128xf32, #tpu.memory_space<vmem>>, %arg1: memref<8x128xf32, #tpu.memory_space<vmem>>) attributes {dimension_semantics = [], scalar_prefetch = 0 : i64, scratch_operands = 0 : i64, tpu.core_type = #tpu.core_type<tc>} {
    %c0 = arith.constant 0 : index
    %c0_0 = arith.constant 0 : index
    %0 = vector.load %arg0[%c0, %c0_0] : memref<24x128xf32, #tpu.memory_space<vmem>>, vector<8x16xf32>
    %c8 = arith.constant 8 : index
    %c0_1 = arith.constant 0 : index
    %1 = vector.load %arg0[%c8, %c0_1] : memref<24x128xf32, #tpu.memory_space<vmem>>, vector<16x64xf32>
    %cst = arith.constant dense<0.000000e+00> : vector<8x64xf32>
    %2 = tpu.matmul %0, %1, %cst {dimension_numbers = #tpu.dot_dimension_numbers<[1], [0], [0], [1], [0, 0, 1, 1], [], []>, precision = #tpu.contract_precision<fp32>} : vector<8x16xf32>, vector<16x64xf32>, vector<8x64xf32> -> vector<8x64xf32>
    %cst_2 = arith.constant dense<0.000000e+00> : vector<64xf32>
    %3 = vector.multi_reduction <add>, %2, %cst_2 [0] : vector<8x64xf32> to vector<64xf32>
    %4 = vector.shape_cast %3 : vector<64xf32> to vector<1x64xf32>
    %cst_3 = arith.constant 8.000000e+00 : f32
    %5 = vector.broadcast %cst_3 : f32 to vector<1x64xf32>
    %6 = arith.divf %4, %5 : vector<1x64xf32>
    %7 = vector.broadcast %6 : vector<1x64xf32> to vector<8x64xf32>
    %8 = arith.subf %2, %7 : vector<8x64xf32>
    %9 = arith.mulf %8, %8 : vector<8x64xf32>
    %cst_4 = arith.constant dense<0.000000e+00> : vector<64xf32>
    %10 = vector.multi_reduction <add>, %9, %cst_4 [0] : vector<8x64xf32> to vector<64xf32>
    %11 = vector.shape_cast %10 : vector<64xf32> to vector<1x64xf32>
    %cst_5 = arith.constant 7.000000e+00 : f32
    %12 = vector.broadcast %cst_5 : f32 to vector<1x64xf32>
    %13 = arith.divf %11, %12 : vector<1x64xf32>
    %14 = vector.broadcast %6 : vector<1x64xf32> to vector<8x64xf32>
    %15 = arith.subf %2, %14 : vector<8x64xf32>
    %16 = math.rsqrt %13 : vector<1x64xf32>
    %17 = vector.broadcast %16 : vector<1x64xf32> to vector<8x64xf32>
    %18 = arith.mulf %15, %17 : vector<8x64xf32>
    %19 = vector.extract_strided_slice %18 {offsets = [0, 0], sizes = [8, 16], strides = [1, 1]} : vector<8x64xf32> to vector<8x16xf32>
    %20 = vector.extract_strided_slice %18 {offsets = [0, 16], sizes = [8, 16], strides = [1, 1]} : vector<8x64xf32> to vector<8x16xf32>
    %21 = arith.addf %19, %20 : vector<8x16xf32>
    %22 = vector.extract_strided_slice %18 {offsets = [0, 32], sizes = [8, 16], strides = [1, 1]} : vector<8x64xf32> to vector<8x16xf32>
    %23 = vector.extract_strided_slice %18 {offsets = [0, 48], sizes = [8, 16], strides = [1, 1]} : vector<8x64xf32> to vector<8x16xf32>
    %24 = arith.addf %22, %23 : vector<8x16xf32>
    %cst_6 = arith.constant 0.000000e+00 : f32
    %25 = vector.broadcast %cst_6 : f32 to vector<8x96xf32>
    %26 = tpu.concatenate %21, %24, %25 in 1 : vector<8x16xf32>, vector<8x16xf32>, vector<8x96xf32> -> vector<8x128xf32>
    %c0_7 = arith.constant 0 : index
    %c0_8 = arith.constant 0 : index
    %27 = vector.load %arg1[%c0_7, %c0_8] : memref<8x128xf32, #tpu.memory_space<vmem>>, vector<8x128xf32>
    tpu.vector_store %arg1[%c0_7, %c0_8], %26 {strides = array<i32>} : memref<8x128xf32, #tpu.memory_space<vmem>>, vector<8x128xf32>,
    return
  }
}

</mosaic_0001>

<bundles_post_ra>
// kernel: shared_group_conv1d.1
= control target key start
LH: loop header
LB: loop body
LE: loop exit
PB: predicated region body
PF: predicated region fallthrough
CT: control target
= control target key end

     0   :  { %vm11_vm0 = vcmask 130048   ;;  %v607_v0 = vmov 0.0|0.0   ;;  %vm608_vm1 = vmmov 0   ;;  %v609_v3 = vmov 0.0   ;;  %s641_s0 = inlined_call_operand.vmem [shape: f32[24,128], index: 0, kind: input, shape index: {}]   ;;  %s642_s1 = inlined_call_operand.vmem [shape: f32[8,128], index: 1, kind: output, shape index: {}]  }
   0x1   :  { %583 = vmatprep.subr.bf16.mxu0 %v607_v0  ;;  %v9_v1 = vld [vmem:[%s641_s0 + $0x8] sm:$0xff]  ;;  %v10_v2 = vld [vmem:[%s641_s0 + $0x10] sm:$0xff]  ;;  %557 = vmatprep.mubr.msk.f32.mxu0 %vm608_vm1, %v609_v3  ;;  %v8_v4 = vld [vmem:[%s641_s0] sm:$0xff]  ;;  %vm474_vm2 = vcmask 523264   ;;  %s610_s0 = smov 112   ;;  %vm507_vm3 = vcmask 261120  }
   0x2   :  { %v16_v5 = vand.u32 4294901760, %v9_v1  ;;  %v19_v6 = vand.u32 4294901760, %v10_v2  ;;  %574 = vmatprep.subr.bf16.mxu1 %v607_v0  ;;  %v13_v7 = vsel %vm11_vm0, %v8_v4, 0  ;;  %536 = vmatprep.mubr.msk.f32.mxu1 %vm608_vm1, %v609_v3 }
   0x3   :  { %v82_v8 = vand.u32 4294901760, %v13_v7 }
   0x4   :  { %v575_v9 = vpack.c.bf16 %v19_v6, %v16_v5  ;;  %v94_v10 = vsub.f32 %v9_v1, %v16_v5  ;;  %v101_v11 = vsub.f32 %v10_v2, %v19_v6 }
   0x5   :  { %v83_v12 = vsub.f32 %v13_v7, %v82_v8 }
   0x6   :  { %585 = vmatpush3.bf16.msra.mxu0 %v575_v9  ;;  %576 = vmatpush3.bf16.msra.mxu1 %v575_v9  ;;  %v95_v13 = vand.u32 4294901760, %v94_v10  ;;  %v102_v14 = vand.u32 4294901760, %v101_v11  ;;  %v581_v24 = vpack.c.bf16 %v101_v11, %v94_v10 }
   0x7   :  { %v84_v15 = vand.u32 4294901760, %v83_v12  ;;  %577 = vmatprep.subr.bf16.mxu1 %v607_v0  ;;  %586 = vmatprep.subr.bf16.mxu0 %v607_v0 }
   0x8   :  { %v96_v16 = vsub.f32 %v94_v10, %v95_v13  ;;  %v103_v17 = vsub.f32 %v101_v11, %v102_v14  ;;  %v587_v18 = vpack.c.bf16 %v102_v14, %v95_v13 }
   0x9   :  { %558 = vmatmul.mubr.f32.vlgmr.msra.gmra.mrb[0].mxu0 %v84_v15  ;;  %v85_v19 = vsub.f32 %v83_v12, %v84_v15 }
   0xa   :  { %v97_v20 = vand.u32 4294901760, %v96_v16  ;;  %v104_v21 = vand.u32 4294901760, %v103_v17  ;;  %588 = vmatpush3.bf16.msra.mxu0 %v587_v18  ;;  %564 = vmatprep.mubr.msk.f32.mxu0 %vm608_vm1, %v609_v3 }
   0xb   :  { %v86_v22 = vand.u32 4294901760, %v85_v19  ;;  %589 = vmatprep.subr.bf16.mxu0 %v607_v0 }
   0xc   :  { %v578_v23 = vpack.c.bf16 %v104_v21, %v97_v20 }
   0xd   :  { %537 = vmatmul.mubr.f32.vlgmr.msra.gmra.mrb[0].mxu1 %v86_v22 }
   0xe   :  { %579 = vmatpush3.bf16.msra.mxu1 %v578_v23  ;;  %543 = vmatprep.mubr.msk.f32.mxu1 %vm608_vm1, %v609_v3 }
   0xf   :  { %580 = vmatprep.subr.bf16.mxu1 %v607_v0 }
  0x11   :  { %565 = vmatmul.mubr.f32.vlgmr.msra.gmra.mrb[0].mxu0 %v82_v8 }
  0x12   :  { %591 = vmatpush3.bf16.msra.mxu0 %v575_v9  ;;  %571 = vmatprep.mubr.msk.f32.mxu0 %vm608_vm1, %v609_v3 }
  0x15   :  { %544 = vmatmul.mubr.f32.vlgmr.msra.gmra.mrb[0].mxu1 %v82_v8 }
  0x16   :  { %582 = vmatpush3.bf16.msra.mxu1 %v581_v24  ;;  %550 = vmatprep.mubr.msk.f32.mxu1 %vm608_vm1, %v609_v3 }
  0x19   :  { %572 = vmatmul.mubr.f32.vlgmr.msra.gmra.mrb[0].mxu0 %v82_v8 }
  0x1d   :  { %551 = vmatmul.mubr.f32.vlgmr.msra.gmra.mrb[0].mxu1 %v83_v12 }
  0xec   :  { %v470_v25 = vpop.f32.mrb[0].mxu0 }
  0xed   :  { %v573_v26 = vpop.f32.mrb[1].mxu0 }
  0xf0   :  { %v245_v27 = vpop.f32.mrb[0].mxu1 }
  0xf1   :  { %v592_v28 = vadd.f32 %v470_v25, %v245_v27  ;;  %v552_v29 = vpop.f32.mrb[1].mxu1 }
  0xf3   :  { %v475_v30 = vsel %vm474_vm2, %v592_v28, 0.0 }
  0xf4   :  { %v476_v31 = vrot.slane %v475_v30, 4 }
  0xf6   :  { %v477_v32 = vadd.f32 %v476_v31, %v475_v30 }
  0xf8   :  { %v478_v33 = vrot.slane %v477_v32, 2 }
  0xfa   :  { %v479_v34 = vadd.f32 %v478_v33, %v477_v32 }
  0xfc   :  { %v480_v35 = vrot.slane %v479_v34, 1 }
  0xfe   :  { %v481_v36 = vadd.f32 %v480_v35, %v479_v34 }
 0x100   :  { %v483_v37 = vmul.f32 0.125, %v481_v36 }
 0x102   :  { %v484_v38 = vsub.f32 %v592_v28, %v483_v37 }
 0x104   :  { %v485_v39 = vmul.f32 %v484_v38, %v484_v38 }
 0x106   :  { %v486_v40 = vsel %vm474_vm2, %v485_v39, 0.0 }
 0x107   :  { %v487_v41 = vrot.slane %v486_v40, 4 }
 0x109   :  { %v488_v42 = vadd.f32 %v487_v41, %v486_v40 }
 0x10b   :  { %v489_v43 = vrot.slane %v488_v42, 2 }
 0x10d   :  { %v490_v44 = vadd.f32 %v489_v43, %v488_v42 }
 0x10f   :  { %v491_v45 = vrot.slane %v490_v44, 1 }
 0x111   :  { %v492_v46 = vadd.f32 %v491_v45, %v490_v44 }
 0x113   :  { %v494_v47 = vmul.f32 0.14285715, %v492_v46 }
 0x115   :  { %605 = vrsqrt.f32 %v494_v47 }
 0x11f   :  { %v606_v48 = vpop.eup %605 }
 0x120   :  { %v496_v49 = vmul.f32 %v606_v48, %v484_v38 }
 0x122   :  { %498 = vrot.lane.b32.xlu0 %v496_v49, %s610_s0 }
 0x194   :  { %v499_v50 = vpop.permute.xlu0 %498 }
 0x195   :  { %v501_v51 = vadd.f32 %v499_v50, %v496_v49 }
 0x197   :  { %503 = vrot.lane.b32.xlu0 %v501_v51, %s610_s0 }
 0x209   :  { %v504_v52 = vpop.permute.xlu0 %503 }
 0x20a   :  { %v506_v53 = vsel %vm11_vm0, %v501_v51, %v504_v52 }
 0x20b   :  { %v508_v54 = vsel %vm507_vm3, %v506_v53, 0.0 }
 0x20c   :  { %509 = vst [vmem:[%s642_s1] sm:$0xff] %v508_v54 }

</bundles_post_ra>
